<compile_context>
chip_gen: v5e
topology: v5e:2x2
jax: 0.10.0
libtpu: 0.0.40
codegen_flags: <defaults>
</compile_context>

<pallas_src>
import functools

import numpy as np
import jax
import jax.numpy as jnp
from jax.experimental import pallas as pl
from jax.experimental.pallas import tpu as pltpu


def _pick_group(H: int, W: int) -> int:
    """Smallest G with H % G == 0 and (G*W) % 128 == 0 (lane-dense tiles)."""
    for g in range(1, H + 1):
        if H % g == 0 and (g * W) % 128 == 0:
            return g
    return 1  # fallback: still correct, just not lane-dense


def _pool_matrix(G: int, W: int) -> jax.Array:
    """(4*G*W, G*W) constant 0/1 matrix mapping a grouped upsampled row (2G x 2W pixels
    flattened into lanes) to its 2x2 sum-pooled grouped row (G x W pixels)."""
    lanes_in = 4 * G * W
    q = np.arange(lanes_in)
    yy = q // (2 * W)                 # row inside the 2G-row group of r
    x = q % (2 * W)                   # column inside the upsampled row
    p = (yy // 2) * W + (x // 2)      # target output lane: g*W + w
    m = np.zeros((lanes_in, G * W), dtype=np.float32)
    m[q, p] = 1.0
    return jnp.asarray(m)


def _lrp_upsample_kernel(a_ref, r_ref, m_ref, out_ref, *, eps: float):
    # a_ref/out_ref: (RB, G*W), r_ref: (RB, 4*G*W), m_ref: (4*G*W, G*W)
    r = r_ref[...].astype(jnp.float32)
    # Fused 2x2 sum-pool: one MXU matmul against a constant 0/1 matrix (exact with
    # HIGHEST precision); overlaps with the next block's DMA.
    pooled = jnp.dot(
        r,
        m_ref[...],
        precision=jax.lax.Precision.HIGHEST,
        preferred_element_type=jnp.float32,
    )
    a = a_ref[...].astype(jnp.float32)
    out = a * pooled / (a + eps)          # memory-bound: plain divide is fine here
    out_ref[...] = out.astype(out_ref.dtype)


def lrp_upsample(a: jax.Array, r: jax.Array, eps: float = 1e-5) -> jax.Array:
    """LRP relevance propagation through a scale_factor=2 nearest Upsample."""
    N, C, H, W = a.shape
    assert r.shape == (N, C, 2 * H, 2 * W), "r must be at the upsampled resolution"

    G = _pick_group(H, W)
    rows = (N * C * H) // G
    lanes_out = G * W
    lanes_in = 4 * G * W

    # Free (contiguous) reshapes only — no host/XLA-side data movement.
    a2 = a.reshape(rows, lanes_out)
    r2 = r.reshape(rows, lanes_in)
    m = _pool_matrix(G, W)

    # ~1 MiB a/out tiles and ~4 MiB r tiles per grid step (double-buffered ~12 MiB VMEM).
    row_block = min(rows, 2048)
    if row_block < rows:
        row_block = max(8, (row_block // 8) * 8)
    grid = (pl.cdiv(rows, row_block),)

    out = pl.pallas_call(
        functools.partial(_lrp_upsample_kernel, eps=eps),
        out_shape=jax.ShapeDtypeStruct((rows, lanes_out), a.dtype),
        grid=grid,
        in_specs=[
            pl.BlockSpec((row_block, lanes_out), lambda i: (i, 0)),
            pl.BlockSpec((row_block, lanes_in), lambda i: (i, 0)),
            # Constant pooling matrix: block index never changes -> stays resident.
            pl.BlockSpec((lanes_in, lanes_out), lambda i: (0, 0)),
        ],
        out_specs=pl.BlockSpec((row_block, lanes_out), lambda i: (i, 0)),
        compiler_params=pltpu.CompilerParams(
            dimension_semantics=("parallel",),
            vmem_limit_bytes=32 * 1024 * 1024,
        ),
    )(a2, r2, m)

    return out.reshape(N, C, H, W)


def _reference(a, r, eps):
    # Pure-JAX reference mirroring the PyTorch autograd computation.
    N, C, H, W = a.shape
    z = jnp.repeat(jnp.repeat(a, 2, axis=2), 2, axis=3) + eps   # nearest upsample
    s = r / z
    c = s.reshape(N, C, H, 2, W, 2).sum(axis=(3, 5))            # Upsample^T(s)
    return a * c


if __name__ == "__main__":
    key = jax.random.PRNGKey(0)
    k1, k2 = jax.random.split(key)

    N, C, H, W = 2, 4, 16, 16
    a = jax.random.normal(k1, (N, C, H, W), dtype=jnp.float32)
    r = jax.random.normal(k2, (N, C, 2 * H, 2 * W), dtype=jnp.float32)

    out = lrp_upsample(a, r, eps=1e-5)
    out = jax.block_until_ready(out)

    ref = _reference(a, r, 1e-5)
    assert out.shape == a.shape
    assert jnp.allclose(out, ref, atol=1e-4, rtol=1e-4), "mismatch vs reference"

    print("KERNEL_OK")
</pallas_src>

<mosaic_0001>
module attributes {stable_mosaic.version = 11 : i64} {
  func.func @_lrp_upsample_kernel(%arg0: i32, %arg1: memref<16x128xf32, #tpu.memory_space<vmem>>, %arg2: memref<16x512xf32, #tpu.memory_space<vmem>>, %arg3: memref<512x128xf32, #tpu.memory_space<vmem>>, %arg4: memref<16x128xf32, #tpu.memory_space<vmem>>) attributes {dimension_semantics = [#tpu.dimension_semantics<parallel>], iteration_bounds = array<i64: 1>, scalar_prefetch = 0 : i64, scratch_operands = 0 : i64, tpu.core_type = #tpu.core_type<tc>, window_params = [{transform_indices = @transform_0, window_bounds = array<i64: 16, 128>}, {transform_indices = @transform_1, window_bounds = array<i64: 16, 512>}, {pipeline_mode = #tpu.pipeline_mode<synchronous>, transform_indices = @transform_2, window_bounds = array<i64: 512, 128>}, {transform_indices = @transform_3, window_bounds = array<i64: 16, 128>}]} {
    %c0 = arith.constant 0 : index
    %c0_0 = arith.constant 0 : index
    %0 = vector.load %arg2[%c0, %c0_0] : memref<16x512xf32, #tpu.memory_space<vmem>>, vector<16x512xf32>
    %c0_1 = arith.constant 0 : index
    %c0_2 = arith.constant 0 : index
    %1 = vector.load %arg3[%c0_1, %c0_2] : memref<512x128xf32, #tpu.memory_space<vmem>>, vector<512x128xf32>
    %cst = arith.constant dense<0.000000e+00> : vector<16x128xf32>
    %2 = tpu.matmul %0, %1, %cst {dimension_numbers = #tpu.dot_dimension_numbers<[1], [0], [0], [1], [0, 0, 1, 1], [], []>, precision = #tpu.contract_precision<fp32>} : vector<16x512xf32>, vector<512x128xf32>, vector<16x128xf32> -> vector<16x128xf32>
    %c0_3 = arith.constant 0 : index
    %c0_4 = arith.constant 0 : index
    %3 = vector.load %arg1[%c0_3, %c0_4] : memref<16x128xf32, #tpu.memory_space<vmem>>, vector<16x128xf32>
    %4 = arith.mulf %3, %2 : vector<16x128xf32>
    %cst_5 = arith.constant 9.99999974E-6 : f32
    %5 = vector.broadcast %cst_5 : f32 to vector<16x128xf32>
    %6 = arith.addf %3, %5 : vector<16x128xf32>
    %7 = arith.divf %4, %6 : vector<16x128xf32>
    %c0_6 = arith.constant 0 : index
    %c0_7 = arith.constant 0 : index
    %8 = vector.load %arg4[%c0_6, %c0_7] : memref<16x128xf32, #tpu.memory_space<vmem>>, vector<16x128xf32>
    tpu.vector_store %arg4[%c0_6, %c0_7], %7 {strides = array<i32>} : memref<16x128xf32, #tpu.memory_space<vmem>>, vector<16x128xf32>,
    return
  }
  func.func @transform_0(%arg0: i32) -> (i32, i32) {
    %c0_i32 = arith.constant 0 : i32
    %c0_i32_0 = arith.constant 0 : i32
    return %arg0, %c0_i32 : i32, i32
  }
  func.func @transform_1(%arg0: i32) -> (i32, i32) {
    %c0_i32 = arith.constant 0 : i32
    %c0_i32_0 = arith.constant 0 : i32
    return %arg0, %c0_i32 : i32, i32
  }
  func.func @transform_2(%arg0: i32) -> (i32, i32) {
    %c0_i32 = arith.constant 0 : i32
    %c0_i32_0 = arith.constant 0 : i32
    %c0_i32_1 = arith.constant 0 : i32
    return %c0_i32, %c0_i32_0 : i32, i32
  }
  func.func @transform_3(%arg0: i32) -> (i32, i32) {
    %c0_i32 = arith.constant 0 : i32
    %c0_i32_0 = arith.constant 0 : i32
    return %arg0, %c0_i32 : i32, i32
  }
}

</mosaic_0001>

<bundles_post_ra>
// kernel: tpu_custom_call.1
= control target key start
LH: loop header
LB: loop body
LE: loop exit
PB: predicated region body
PF: predicated region fallthrough
CT: control target
= control target key end

     0   :  { %8 = vsyncpa [#allocation3], 0  ;;  %s2925_s0 = inlined_call_operand.hbm [shape: f32[16,128], index: 0, kind: input, shape index: {}]   ;;  %s2926_s1 = inlined_call_operand.hbm [shape: f32[16,512], index: 1, kind: input, shape index: {}]   ;;  %s2927_s2 = inlined_call_operand.hbm [shape: f32[512,128], index: 2, kind: input, shape index: {}]   ;;  %s2928_s3 = inlined_call_operand.hbm [shape: f32[16,128], index: 3, kind: output, shape index: {}]  }
   0x1   :  { %9 = vsyncpa [#allocation6], 0  ;;  %s28_s14 = sshll.u32 %s2926_s1, 4  ;;  %s29_s14 = int_to_ptr.hbm [resolvable:$true] %s28_s14 }
   0x2   :  { %10 = vsyncpa [#allocation4], 0  ;;  %s1794_s15 = smov [#allocation5]   ;;  %s15_s19 = sshll.u32 %s2925_s0, 4  ;;  %s16_s19 = int_to_ptr.hbm [resolvable:$true] %s15_s19 }
   0x3   :  { %s30_s16 = sshll.u32 %s1794_s15, 4  ;;  %s1795_s20 = smov 512   ;;  %s31_s16 = int_to_ptr.vmem [resolvable:$true] %s30_s16 }
   0x4   :  { %s1796_s21 = smov 32   ;;  %s1797_s22 = smov [#allocation2]  }
   0x5   :  { %36 = dma.hbm_to_vmem [thread:$0]  %s29_s14, 1024, %s31_s16, [#allocation6], %s1795_s20, %s1795_s20, %s1796_s21  }
   0x6   :  { %s17_s23 = sshll.u32 %s1797_s22, 4  ;;  %s1798_s24 = smov 128   ;;  %s18_s23 = int_to_ptr.vmem [resolvable:$true] %s17_s23 }
   0x7   :  { %s1799_s25 = smov 8   ;;  %s41_s27 = sshll.u32 %s2927_s2, 4  ;;  %s42_s27 = int_to_ptr.hbm [resolvable:$true] %s41_s27 }
   0x8   :  { %23 = dma.hbm_to_vmem [thread:$0]  %s16_s19, 256, %s18_s23, [#allocation3], %s1798_s24, %s1798_s24, %s1799_s25  }
   0x9   :  { %s1800_s28 = smov [#allocation7]  }
   0xa   :  { %s43_s0 = sshll.u32 %s1800_s28, 4  ;;  %s44_s0 = int_to_ptr.vmem [resolvable:$true] %s43_s0 }
   0xb   :  { %49 = dma.hbm_to_vmem [thread:$0]  %s42_s27, 8192, %s44_s0, [#allocation6], %s1798_s24, %s1798_s24, %s1799_s25  }
   0xc   :  { %1788 = dma.done.wait [#allocation3], 256  }
   0xd   :  { %1789 = vsyncadd [#allocation3], 4294967040 }
   0xe   :  { %1790 = dma.done.wait [#allocation6], 9216  }
   0xf   :  { %1791 = vsyncadd [#allocation6], 4294958080  ;;  %v85_v0 = vld [vmem:[#allocation7 + $0x78] sm:$0xff]  ;;  %v84_v1 = vld [vmem:[#allocation7 + $0x70] sm:$0xff]  ;;  %s1801_s2 = smov [#allocation8]   ;;  %s1666_s5 = sshll.u32 %s2928_s3, 4  ;;  %s1667_s5 = int_to_ptr.hbm [resolvable:$true] %s1666_s5 }
  0x10   :  { %v83_v2 = vld [vmem:[#allocation7 + $0x68] sm:$0xff]  ;;  %v1837_v3 = vand.u32 4294901760, %v85_v0  ;;  %v1839_v4 = vand.u32 4294901760, %v84_v1  ;;  %v82_v6 = vld [vmem:[#allocation7 + $0x60] sm:$0xff]  ;;  %v81_v7 = vld [vmem:[#allocation7 + $0x58] sm:$0xff]  ;;  %s1664_s29 = sshll.u32 %s1801_s2, 4  ;;  %s1665_s29 = int_to_ptr.vmem [resolvable:$true] %s1664_s29 }
  0x11   :  { %v1841_v5 = vand.u32 4294901760, %v83_v2  ;;  %v80_v8 = vld [vmem:[#allocation7 + $0x50] sm:$0xff]  ;;  %v1843_v9 = vand.u32 4294901760, %v82_v6  ;;  %v1845_v10 = vand.u32 4294901760, %v81_v7  ;;  %v79_v12 = vld [vmem:[#allocation7 + $0x48] sm:$0xff]  ;;  %v78_v13 = vld [vmem:[#allocation7 + $0x40] sm:$0xff] }
  0x12   :  { %v1847_v11 = vand.u32 4294901760, %v80_v8  ;;  %135 = vmatpush.msra.mxu0 %v1837_v3  ;;  %v1851_v14 = vsub.f32 %v85_v0, %v1837_v3  ;;  %v1854_v15 = vsub.f32 %v84_v1, %v1839_v4  ;;  %348 = vmatpush.msra.mxu3 %v1837_v3  ;;  %v1860_v17 = vand.u32 4294901760, %v79_v12  ;;  %v77_v18 = vld [vmem:[#allocation7 + $0x38] sm:$0xff]  ;;  %v76_v26 = vld [vmem:[#allocation7 + $0x30] sm:$0xff]  ;;  %v75_v36 = vld [vmem:[#allocation7 + $0x28] sm:$0xff] }
  0x13   :  { %v1858_v16 = vsub.f32 %v83_v2, %v1841_v5  ;;  %v1863_v19 = vsub.f32 %v82_v6, %v1843_v9  ;;  %v1866_v20 = vsub.f32 %v81_v7, %v1845_v10  ;;  %v1868_v21 = vand.u32 4294901760, %v78_v13  ;;  %v74_v42 = vld [vmem:[#allocation7 + $0x20] sm:$0xff]  ;;  %v73_v48 = vld [vmem:[#allocation7 + $0x18] sm:$0xff]  ;;  %v72_v54 = vld [vmem:[#allocation7 + $0x10] sm:$0xff] }
  0x14   :  { %137 = vmatpush.msra.mxu0 %v1839_v4  ;;  %290 = vmatpush.msra.mxu2 %v1851_v14  ;;  %v185_v22 = vand.u32 4294901760, %v1851_v14  ;;  %v2945_v23 = vand.u32 4294901760, %v1854_v15  ;;  %v1876_v25 = vsub.f32 %v80_v8, %v1847_v11  ;;  %v1880_v28 = vand.u32 4294901760, %v77_v18  ;;  %v101_v59 = vld [vmem:[#allocation7 + $0xf8] sm:$0xff]  ;;  %v71_v61 = vld [vmem:[#allocation7 + $0x8] sm:$0xff]  ;;  %v100_v2 = vld [vmem:[#allocation7 + $0xf0] sm:$0xff] }
  0x15   :  { %v2942_v24 = vand.u32 4294901760, %v1858_v16  ;;  %350 = vmatpush.msra.mxu3 %v1839_v4  ;;  %v2941_v27 = vand.u32 4294901760, %v1863_v19  ;;  %v1883_v29 = vsub.f32 %v79_v12, %v1860_v17  ;;  %v2938_v33 = vand.u32 4294901760, %v1866_v20  ;;  %v70_v7 = vld [vmem:[#allocation7] sm:$0xff] }
  0x16   :  { %139 = vmatpush.msra.mxu0 %v1841_v5  ;;  %293 = vmatpush.msra.mxu2 %v1854_v15  ;;  %v186_v30 = vsub.f32 %v1851_v14, %v185_v22  ;;  %v192_v31 = vsub.f32 %v1854_v15, %v2945_v23  ;;  %v1898_v34 = vand.u32 4294901760, %v76_v26  ;;  %v1901_v35 = vsub.f32 %v78_v13, %v1868_v21 }
  0x17   :  { %v198_v32 = vsub.f32 %v1858_v16, %v2942_v24  ;;  %352 = vmatpush.msra.mxu3 %v1841_v5  ;;  %v204_v39 = vsub.f32 %v1863_v19, %v2941_v27  ;;  %v2937_v40 = vand.u32 4294901760, %v1876_v25  ;;  %v2935_v41 = vand.u32 4294901760, %v1883_v29 }
  0x18   :  { %141 = vmatpush.msra.mxu0 %v1843_v9  ;;  %v187_v37 = vand.u32 4294901760, %v186_v30  ;;  %296 = vmatpush.msra.mxu2 %v1858_v16  ;;  %v193_v38 = vand.u32 4294901760, %v192_v31  ;;  %v210_v44 = vsub.f32 %v1866_v20, %v2938_v33  ;;  %v1915_v45 = vand.u32 4294901760, %v75_v36  ;;  %v99_v30 = vld [vmem:[#allocation7 + $0xe8] sm:$0xff] }
  0x19   :  { %354 = vmatpush.msra.mxu3 %v1843_v9  ;;  %v199_v43 = vand.u32 4294901760, %v198_v32  ;;  %v1918_v46 = vsub.f32 %v77_v18, %v1880_v28  ;;  %v2934_v47 = vand.u32 4294901760, %v1901_v35  ;;  %v205_v49 = vand.u32 4294901760, %v204_v39 }
  0x1a   :  { %143 = vmatpush.msra.mxu0 %v1845_v10  ;;  %188 = vmatpush.msra.mxu1 %v187_v37  ;;  %v216_v50 = vsub.f32 %v1876_v25, %v2937_v40  ;;  %v1927_v51 = vand.u32 4294901760, %v74_v42  ;;  %v1930_v52 = vsub.f32 %v76_v26, %v1898_v34  ;;  %v222_v53 = vsub.f32 %v1883_v29, %v2935_v41 }
  0x1b   :  { %299 = vmatpush.msra.mxu2 %v1863_v19  ;;  %356 = vmatpush.msra.mxu3 %v1845_v10  ;;  %v211_v55 = vand.u32 4294901760, %v210_v44  ;;  %v1938_v56 = vand.u32 4294901760, %v73_v48  ;;  %v2932_v57 = vand.u32 4294901760, %v1918_v46  ;;  %v1942_v58 = vsub.f32 %v75_v36, %v1915_v45 }
  0x1c   :  { %145 = vmatpush.msra.mxu0 %v1847_v11  ;;  %194 = vmatpush.msra.mxu1 %v193_v38  ;;  %v228_v60 = vsub.f32 %v1901_v35, %v2934_v47  ;;  %v217_v62 = vand.u32 4294901760, %v216_v50  ;;  %v1950_v63 = vand.u32 4294901760, %v72_v54  ;;  %v2931_v0 = vand.u32 4294901760, %v1930_v52 }
  0x1d   :  { %302 = vmatpush.msra.mxu2 %v1866_v20  ;;  %358 = vmatpush.msra.mxu3 %v1847_v11  ;;  %v1954_v1 = vsub.f32 %v74_v42, %v1927_v51  ;;  %v223_v6 = vand.u32 4294901760, %v222_v53  ;;  %v1958_v8 = vand.u32 4294901760, %v101_v59  ;;  %v234_v12 = vsub.f32 %v1918_v46, %v2932_v57  ;;  %v98_v42 = vld [vmem:[#allocation7 + $0xe0] sm:$0xff]  ;;  %v95_v57 = vld [vmem:[#allocation7 + $0xc8] sm:$0xff] }
  0x1e   :  { %147 = vmatpush.msra.mxu0 %v1860_v17  ;;  %200 = vmatpush.msra.mxu1 %v199_v43  ;;  %v1964_v13 = vand.u32 4294901760, %v71_v61  ;;  %v2930_v18 = vand.u32 4294901760, %v1942_v58  ;;  %v1968_v26 = vsub.f32 %v73_v48, %v1938_v56  ;;  %v229_v31 = vand.u32 4294901760, %v228_v60 }
  0x1f   :  { %305 = vmatpush.msra.mxu2 %v1876_v25  ;;  %360 = vmatpush.msra.mxu3 %v1860_v17  ;;  %v1972_v32 = vand.u32 4294901760, %v100_v2  ;;  %v240_v36 = vsub.f32 %v1930_v52, %v2931_v0  ;;  %v1978_v37 = vand.u32 4294901760, %v70_v7  ;;  %v2929_v38 = vand.u32 4294901760, %v1954_v1 }
  0x20   :  { %149 = vmatpush.msra.mxu0 %v1868_v21  ;;  %206 = vmatpush.msra.mxu1 %v205_v49  ;;  %v1982_v39 = vsub.f32 %v72_v54, %v1950_v63  ;;  %v1987_v43 = vsub.f32 %v101_v59, %v1958_v8  ;;  %v1989_v44 = vand.u32 4294901760, %v99_v30  ;;  %v235_v48 = vand.u32 4294901760, %v234_v12  ;;  %v97_v59 = vld [vmem:[#allocation7 + $0xd8] sm:$0xff] }
  0x21   :  { %308 = vmatpush.msra.mxu2 %v1883_v29  ;;  %362 = vmatpush.msra.mxu3 %v1868_v21  ;;  %2974 = vst [vmem:[#allocation12_spill] sm:$0xff] %v1978_v37  ;;  %v246_v49 = vsub.f32 %v1942_v58, %v2930_v18  ;;  %v2933_v50 = vand.u32 4294901760, %v1968_v26  ;;  %v1997_v53 = vsub.f32 %v71_v61, %v1964_v13  ;;  %v241_v60 = vand.u32 4294901760, %v240_v36 }
  0x22   :  { %151 = vmatpush.msra.mxu0 %v1880_v28  ;;  %212 = vmatpush.msra.mxu1 %v211_v55  ;;  %v2002_v54 = vsub.f32 %v100_v2, %v1972_v32  ;;  %v2004_v55 = vand.u32 4294901760, %v98_v42  ;;  %v2936_v61 = vand.u32 4294901760, %v1982_v39  ;;  %v2939_v2 = vand.u32 4294901760, %v1987_v43 }
  0x23   :  { %311 = vmatpush.msra.mxu2 %v1901_v35  ;;  %364 = vmatpush.msra.mxu3 %v1880_v28  ;;  %v2018_v12 = vsub.f32 %v99_v30, %v1989_v44  ;;  %v247_v36 = vand.u32 4294901760, %v246_v49  ;;  %v2025_v18 = vand.u32 4294901760, %v97_v59  ;;  %v2053_v33 = vand.u32 4294901760, %v95_v57 }
  0x24   :  { %153 = vmatpush.msra.mxu0 %v1898_v34  ;;  %218 = vmatpush.msra.mxu1 %v217_v62  ;;  %v252_v62 = vsub.f32 %v1954_v1, %v2929_v38  ;;  %v258_v38 = vsub.f32 %v1968_v26, %v2933_v50  ;;  %v2943_v30 = vand.u32 4294901760, %v2002_v54  ;;  %v2031_v0 = vsub.f32 %v98_v42, %v2004_v55 }
  0x25   :  { %314 = vmatpush.msra.mxu2 %v1918_v46  ;;  %366 = vmatpush.msra.mxu3 %v1898_v34  ;;  %v264_v49 = vsub.f32 %v1982_v39, %v2936_v61  ;;  %v558_v42 = vsub.f32 %v1987_v43, %v2939_v2  ;;  %v2946_v41 = vand.u32 4294901760, %v2018_v12  ;;  %v2051_v40 = vsub.f32 %v97_v59, %v2025_v18 }
  0x26   :  { %155 = vmatpush.msra.mxu0 %v1915_v45  ;;  %224 = vmatpush.msra.mxu1 %v223_v6  ;;  %v2012_v6 = vsub.f32 %v70_v7, %v1978_v37  ;;  %v2940_v7 = vand.u32 4294901760, %v1997_v53  ;;  %v564_v2 = vsub.f32 %v2002_v54, %v2943_v30  ;;  %v2975_v14 = vand.u32 4294901760, %v1854_v15 }
  0x27   :  { %317 = vmatpush.msra.mxu2 %v1930_v52  ;;  %368 = vmatpush.msra.mxu3 %v1915_v45  ;;  %v559_v30 = vand.u32 4294901760, %v558_v42  ;;  %v2976_v42 = vand.u32 4294901760, %v2031_v0  ;;  %v2977_v15 = vand.u32 4294901760, %v1858_v16  ;;  %v2979_v16 = vand.u32 4294901760, %v1863_v19 }
  0x28   :  { %157 = vmatpush.msra.mxu0 %v1927_v51  ;;  %230 = vmatpush.msra.mxu1 %v229_v31  ;;  %v96_v31 = vld [vmem:[#allocation7 + $0xd0] sm:$0xff]  ;;  %v2944_v50 = vand.u32 4294901760, %v2012_v6  ;;  %v270_v61 = vsub.f32 %v1997_v53, %v2940_v7  ;;  %v265_v7 = vand.u32 4294901760, %v264_v49  ;;  %v2981_v19 = vand.u32 4294901760, %v1866_v20 }
  0x29   :  { %320 = vmatpush.msra.mxu2 %v1942_v58  ;;  %370 = vmatpush.msra.mxu3 %v1927_v51  ;;  %v2038_v47 = vand.u32 4294901760, %v96_v31  ;;  %v92_v49 = vld [vmem:[#allocation7 + $0xb0] sm:$0xff] }
  0x2a   :  { %159 = vmatpush.msra.mxu0 %v1938_v56  ;;  %236 = vmatpush.msra.mxu1 %v235_v48  ;;  %v253_v48 = vand.u32 4294901760, %v252_v62  ;;  %v259_v62 = vand.u32 4294901760, %v258_v38  ;;  %v93_v38 = vld [vmem:[#allocation7 + $0xb8] sm:$0xff]  ;;  %v276_v59 = vsub.f32 %v2012_v6, %v2944_v50  ;;  %v2079_v50 = vsub.f32 %v95_v57, %v2053_v33 }
  0x2b   :  { %323 = vmatpush.msra.mxu2 %v1954_v1  ;;  %372 = vmatpush.msra.mxu3 %v1938_v56  ;;  %v2066_v27 = vsub.f32 %v96_v31, %v2038_v47  ;;  %v2081_v23 = vand.u32 4294901760, %v93_v38 }
  0x2c   :  { %161 = vmatpush.msra.mxu0 %v1950_v63  ;;  %242 = vmatpush.msra.mxu1 %v241_v60  ;;  %v94_v60 = vld [vmem:[#allocation7 + $0xc0] sm:$0xff] }
  0x2d   :  { %326 = vmatpush.msra.mxu2 %v1968_v26  ;;  %374 = vmatpush.msra.mxu3 %v1950_v63  ;;  %v2068_v24 = vand.u32 4294901760, %v94_v60 }
  0x2e   :  { %163 = vmatpush.msra.mxu0 %v1964_v13  ;;  %248 = vmatpush.msra.mxu1 %v247_v36  ;;  %v271_v36 = vand.u32 4294901760, %v270_v61  ;;  %v91_v61 = vld [vmem:[#allocation7 + $0xa8] sm:$0xff] }
  0x2f   :  { %329 = vmatpush.msra.mxu2 %v1982_v39  ;;  %376 = vmatpush.msra.mxu3 %v1964_v13  ;;  %v2092_v31 = vsub.f32 %v94_v60, %v2068_v24  ;;  %v2104_v60 = vsub.f32 %v93_v38, %v2081_v23  ;;  %v2106_v57 = vand.u32 4294901760, %v91_v61 }
  0x30   :  { %165 = vmatpush.msra.mxu0 %v1978_v37  ;;  %254 = vmatpush.msra.mxu1 %v253_v48  ;;  %v570_v48 = vsub.f32 %v2018_v12, %v2946_v41  ;;  %v277_v41 = vand.u32 4294901760, %v276_v59 }
  0x31   :  { %332 = vmatpush.msra.mxu2 %v1997_v53  ;;  %378 = vmatpush.msra.mxu3 %v1978_v37  ;;  %v2094_v37 = vand.u32 4294901760, %v92_v49 }
  0x32   :  { %395 = vmatpush.msrb.mxu0 %v185_v22  ;;  %260 = vmatpush.msra.mxu1 %v259_v62  ;;  %v565_v22 = vand.u32 4294901760, %v564_v2  ;;  %v576_v62 = vsub.f32 %v2031_v0, %v2976_v42  ;;  %v571_v2 = vand.u32 4294901760, %v570_v48  ;;  %v90_v42 = vld [vmem:[#allocation7 + $0xa0] sm:$0xff] }
  0x33   :  { %335 = vmatpush.msra.mxu2 %v2012_v6  ;;  %560 = vmatpush.msrb.mxu3 %v559_v30 }
  0x34   :  { %399 = vmatpush.msrb.mxu0 %v2975_v14  ;;  %266 = vmatpush.msra.mxu1 %v265_v7  ;;  %v62_v14 = vld [vmem:[#allocation5] sm:$0xff]  ;;  %v2978_v7 = vand.u32 4294901760, %v2051_v40  ;;  %v577_v30 = vand.u32 4294901760, %v576_v62 }
  0x35   :  { %507 = vmatpush.msrb.mxu2 %v1958_v8  ;;  %566 = vmatpush.msrb.mxu3 %v565_v22  ;;  %v2118_v38 = vand.u32 4294901760, %v62_v14  ;;  %v2982_v22 = vand.u32 4294901760, %v2079_v50 }
  0x36   :  { %403 = vmatpush.msrb.mxu0 %v2977_v15  ;;  %272 = vmatpush.msra.mxu1 %v271_v36  ;;  %v582_v59 = vsub.f32 %v2051_v40, %v2978_v7  ;;  %v2980_v36 = vand.u32 4294901760, %v2066_v27  ;;  %v2116_v7 = vsub.f32 %v92_v49, %v2094_v37  ;;  %v2129_v49 = vsub.f32 %v91_v61, %v2106_v57 }
  0x37   :  { %509 = vmatpush.msrb.mxu2 %v1972_v32  ;;  %572 = vmatpush.msrb.mxu3 %v571_v2  ;;  %v594_v62 = vsub.f32 %v2079_v50, %v2982_v22  ;;  %v2983_v15 = vand.u32 4294901760, %v1876_v25  ;;  %v2984_v2 = vand.u32 4294901760, %v2092_v31  ;;  %v2142_v61 = vsub.f32 %v62_v14, %v2118_v38  ;;  %v88_v22 = vld [vmem:[#allocation7 + $0x90] sm:$0xff] }
  0x38   :  { %407 = vmatpush.msrb.mxu0 %v2979_v16  ;;  %278 = vmatpush.msra.mxu1 %v277_v41  ;;  %v588_v48 = vsub.f32 %v2066_v27, %v2980_v36  ;;  %v583_v41 = vand.u32 4294901760, %v582_v59  ;;  %v2949_v16 = vand.u32 4294901760, %v2104_v60  ;;  %v89_v36 = vld [vmem:[#allocation7 + $0x98] sm:$0xff]  ;;  %v2985_v25 = vand.u32 4294901760, %v1883_v29 }
  0x39   :  { %511 = vmatpush.msrb.mxu2 %v1989_v44  ;;  %578 = vmatpush.msrb.mxu3 %v577_v30  ;;  %v600_v59 = vsub.f32 %v2092_v31, %v2984_v2  ;;  %v595_v30 = vand.u32 4294901760, %v594_v62  ;;  %v2986_v14 = vand.u32 4294901760, %v1901_v35  ;;  %v87_v2 = vld [vmem:[#allocation7 + $0x88] sm:$0xff]  ;;  %v168_v35 = vand.u32 4294901760, %v2142_v61 }
  0x3a   :  { %411 = vmatpush.msrb.mxu0 %v2981_v19  ;;  %466 = vmatpush.msrb.mxu1 %v1837_v3  ;;  %v2134_v3 = vand.u32 4294901760, %v90_v42  ;;  %v589_v20 = vand.u32 4294901760, %v588_v48  ;;  %v2948_v19 = vand.u32 4294901760, %v2116_v7  ;;  %v606_v48 = vsub.f32 %v2104_v60, %v2949_v16  ;;  %v86_v16 = vld [vmem:[#allocation7 + $0x80] sm:$0xff] }
  0x3b   :  { %513 = vmatpush.msrb.mxu2 %v2004_v55  ;;  %584 = vmatpush.msrb.mxu3 %v583_v41  ;;  %v601_v41 = vand.u32 4294901760, %v600_v59  ;;  %v2177_v59 = vand.u32 4294901760, %v87_v2 }
  0x3c   :  { %415 = vmatpush.msrb.mxu0 %v2983_v15  ;;  %468 = vmatpush.msrb.mxu1 %v1839_v4  ;;  %v2147_v4 = vand.u32 4294901760, %v89_v36  ;;  %v617_v15 = vand.u32 4294901760, %v2129_v49  ;;  %v2158_v29 = vsub.f32 %v90_v42, %v2134_v3  ;;  %v612_v62 = vsub.f32 %v2116_v7, %v2948_v19 }
  0x3d   :  { %515 = vmatpush.msrb.mxu2 %v2025_v18  ;;  %590 = vmatpush.msrb.mxu3 %v589_v20  ;;  %v607_v42 = vand.u32 4294901760, %v606_v48  ;;  %v169_v48 = vsub.f32 %v2142_v61, %v168_v35 }
  0x3e   :  { %419 = vmatpush.msrb.mxu0 %v2985_v25  ;;  %470 = vmatpush.msrb.mxu1 %v1841_v5  ;;  %v2160_v5 = vand.u32 4294901760, %v88_v22  ;;  %v66_v25 = vld [vmem:[#allocation5 + $0x20] sm:$0xff]  ;;  %v618_v20 = vsub.f32 %v2129_v49, %v617_v15 }
  0x3f   :  { %517 = vmatpush.msrb.mxu2 %v2038_v47  ;;  %596 = vmatpush.msrb.mxu3 %v595_v30  ;;  %v2179_v19 = vand.u32 4294901760, %v66_v25  ;;  %v613_v30 = vand.u32 4294901760, %v612_v62  ;;  %v2990_v62 = vand.u32 4294901760, %v1954_v1 }
  0x40   :  { %423 = vmatpush.msrb.mxu0 %v2986_v14  ;;  %472 = vmatpush.msrb.mxu1 %v1843_v9  ;;  %v2987_v14 = vand.u32 4294901760, %v1918_v46  ;;  %v2171_v9 = vsub.f32 %v89_v36, %v2147_v4  ;;  %v2988_v46 = vand.u32 4294901760, %v1930_v52  ;;  %v2186_v36 = vsub.f32 %v88_v22, %v2160_v5 }
  0x41   :  { %519 = vmatpush.msrb.mxu2 %v2053_v33  ;;  %602 = vmatpush.msrb.mxu3 %v601_v41  ;;  %v175_v22 = vsub.f32 %v66_v25, %v2179_v19  ;;  %v2199_v41 = vsub.f32 %v87_v2, %v2177_v59  ;;  %v2991_v25 = vand.u32 4294901760, %v1968_v26  ;;  %v2992_v26 = vand.u32 4294901760, %v1982_v39 }
  0x42   :  { %427 = vmatpush.msrb.mxu0 %v2987_v14  ;;  %474 = vmatpush.msrb.mxu1 %v1845_v10  ;;  %v623_v10 = vand.u32 4294901760, %v2158_v29  ;;  %v2989_v14 = vand.u32 4294901760, %v1942_v58  ;;  %v629_v52 = vand.u32 4294901760, %v2171_v9  ;;  %v635_v58 = vand.u32 4294901760, %v2186_v36 }
  0x43   :  { %521 = vmatpush.msrb.mxu2 %v2068_v24  ;;  %608 = vmatpush.msrb.mxu3 %v607_v42  ;;  %v170_v42 = vand.u32 4294901760, %v169_v48  ;;  %v641_v2 = vand.u32 4294901760, %v2199_v41 }
  0x44   :  { %431 = vmatpush.msrb.mxu0 %v2988_v46  ;;  %476 = vmatpush.msrb.mxu1 %v1847_v11  ;;  %v2194_v46 = vand.u32 4294901760, %v86_v16  ;;  %v619_v11 = vand.u32 4294901760, %v618_v20  ;;  %v176_v20 = vand.u32 4294901760, %v175_v22  ;;  %v636_v48 = vsub.f32 %v2186_v36, %v635_v58 }
  0x45   :  { %523 = vmatpush.msrb.mxu2 %v2081_v23  ;;  %614 = vmatpush.msrb.mxu3 %v613_v30 }
  0x46   :  { %435 = vmatpush.msrb.mxu0 %v2989_v14  ;;  %478 = vmatpush.msrb.mxu1 %v1860_v17  ;;  %v624_v17 = vsub.f32 %v2158_v29, %v623_v10  ;;  %v63_v14 = vld [vmem:[#allocation5 + $0x8] sm:$0xff]  ;;  %v2216_v1 = vsub.f32 %v86_v16, %v2194_v46  ;;  %v2993_v16 = vand.u32 4294901760, %v1997_v53  ;;  %v177_v39 = vsub.f32 %v175_v22, %v176_v20 }
  0x47   :  { %525 = vmatpush.msrb.mxu2 %v2094_v37  ;;  %620 = vmatpush.msrb.mxu3 %v619_v11  ;;  %v2220_v30 = vand.u32 4294901760, %v63_v14  ;;  %v637_v53 = vand.u32 4294901760, %v636_v48 }
  0x48   :  { %439 = vmatpush.msrb.mxu0 %v2990_v62  ;;  %480 = vmatpush.msrb.mxu1 %v1868_v21  ;;  %v630_v21 = vsub.f32 %v2171_v9, %v629_v52  ;;  %v647_v11 = vand.u32 4294901760, %v2216_v1 }
  0x49   :  { %527 = vmatpush.msrb.mxu2 %v2106_v57  ;;  %171 = vmatmul.f32.vlgmr.msra.gmra.mxu0 %v170_v42  ;;  %v2238_v62 = vsub.f32 %v63_v14, %v2220_v30  ;;  %v178_v14 = vand.u32 4294901760, %v177_v39 }
  0x4a   :  { %443 = vmatpush.msrb.mxu0 %v2991_v25  ;;  %482 = vmatpush.msrb.mxu1 %v1880_v28  ;;  %v625_v28 = vand.u32 4294901760, %v624_v17  ;;  %v2997_v25 = vld [vmem:[#allocation12_spill] sm:$0xff] }
  0x4b   :  { %338 = vmatmul.f32.vlgmr.msra.gmra.mxu2 %v2142_v61  ;;  %382 = vmatmul.f32.vlgmr.msra.gmra.mxu3 %v168_v35  ;;  %v631_v61 = vand.u32 4294901760, %v630_v21  ;;  %v2994_v35 = vand.u32 4294901760, %v2012_v6  ;;  %v540_v42 = vand.u32 4294901760, %v2238_v62  ;;  %v2995_v6 = vand.u32 4294901760, %v1987_v43  ;;  %v67_v21 = vld [vmem:[#allocation5 + $0x28] sm:$0xff] }
  0x4c   :  { %447 = vmatpush.msrb.mxu0 %v2992_v26  ;;  %484 = vmatpush.msrb.mxu1 %v1898_v34  ;;  %v642_v34 = vsub.f32 %v2199_v41, %v641_v2  ;;  %v109_v26 = vld [vmem:[#allocation7 + $0x138] sm:$0xff] }
  0x4d   :  { %529 = vmatpush.msrb.mxu2 %v2134_v3  ;;  %626 = vmatpush.msrb.mxu3 %v625_v28 }
  0x4e   :  { %451 = vmatpush.msrb.mxu0 %v2993_v16  ;;  %486 = vmatpush.msrb.mxu1 %v1915_v45  ;;  %v648_v45 = vsub.f32 %v2216_v1, %v647_v11  ;;  %v643_v17 = vand.u32 4294901760, %v642_v34  ;;  %v108_v34 = vld [vmem:[#allocation7 + $0x130] sm:$0xff] }
  0x4f   :  { %531 = vmatpush.msrb.mxu2 %v2147_v4  ;;  %280 = vmatmul.f32.vlgmr.msra.gmra.mxu1 %v2118_v38 }
  0x50   :  { %455 = vmatpush.msrb.mxu0 %v2994_v35  ;;  %488 = vmatpush.msrb.mxu1 %v1927_v51  ;;  %v649_v51 = vand.u32 4294901760, %v648_v45  ;;  %v107_v35 = vld [vmem:[#allocation7 + $0x128] sm:$0xff] }
  0x51   :  { %533 = vmatpush.msrb.mxu2 %v2160_v5  ;;  %632 = vmatpush.msrb.mxu3 %v631_v61 }
  0x52   :  { %662 = vmatpush.msra.mxu0 %v1987_v43  ;;  %490 = vmatpush.msrb.mxu1 %v1938_v56  ;;  %v541_v56 = vsub.f32 %v2238_v62, %v540_v42  ;;  %v2274_v43 = vand.u32 4294901760, %v67_v21 }
  0x53   :  { %535 = vmatpush.msrb.mxu2 %v2177_v59  ;;  %638 = vmatpush.msrb.mxu3 %v637_v53 }
  0x54   :  { %343 = vmatmul.f32.gmra.mxu2 %v175_v22  ;;  %665 = vmatpush.msra.mxu0 %v2002_v54  ;;  %v542_v22 = vand.u32 4294901760, %v541_v56 }
  0x55   :  { %492 = vmatpush.msrb.mxu1 %v1950_v63  ;;  %537 = vmatpush.msrb.mxu2 %v2194_v46  ;;  %v2996_v63 = vand.u32 4294901760, %v2002_v54  ;;  %v2999_v54 = vand.u32 4294901760, %v2031_v0 }
  0x56   :  { %644 = vmatpush.msrb.mxu3 %v643_v17  ;;  %179 = vmatmul.f32.gmra.mxu0 %v178_v14  ;;  %v2427_v17 = vand.u32 4294901760, %v108_v34 }
  0x57   :  { %388 = vmatmul.f32.gmra.mxu3 %v176_v20  ;;  %668 = vmatpush.msra.mxu0 %v2018_v12 }
  0x58   :  { %767 = vmatpush.msra.mxu2 %v2995_v6  ;;  %494 = vmatpush.msrb.mxu1 %v1964_v13  ;;  %v2998_v13 = vand.u32 4294901760, %v2018_v12  ;;  %v2287_v12 = vsub.f32 %v67_v21, %v2274_v43 }
  0x59   :  { %650 = vmatpush.msrb.mxu3 %v649_v51  ;;  %284 = vmatmul.f32.gmra.mxu1 %v2179_v19 }
  0x5a   :  { %671 = vmatpush.msra.mxu0 %v2031_v0  ;;  %771 = vmatpush.msra.mxu2 %v2996_v63  ;;  %v3001_v0 = vand.u32 4294901760, %v2066_v27  ;;  %v64_v63 = vld [vmem:[#allocation5 + $0x10] sm:$0xff] }
  0x5b   :  { %838 = vmatpush.msra.mxu3 %v1958_v8  ;;  %496 = vmatpush.msrb.mxu1 %v2997_v25  ;;  %v105_v25 = vld [vmem:[#allocation7 + $0x118] sm:$0xff] }
  0x5c   :  { %674 = vmatpush.msra.mxu0 %v2051_v40  ;;  %775 = vmatpush.msra.mxu2 %v2998_v13 }
  0x5d   :  { %720 = vmatpush.msra.mxu1 %v1958_v8  ;;  %840 = vmatpush.msra.mxu3 %v1972_v32  ;;  %v3000_v8 = vand.u32 4294901760, %v2051_v40  ;;  %v548_v40 = vand.u32 4294901760, %v2287_v12 }
  0x5e   :  { %543 = vmatmul.f32.vlgmr.msrb.gmra.mxu2 %v542_v22  ;;  %677 = vmatpush.msra.mxu0 %v2066_v27  ;;  %v3003_v27 = vand.u32 4294901760, %v2092_v31 }
  0x5f   :  { %722 = vmatpush.msra.mxu1 %v1972_v32  ;;  %779 = vmatpush.msra.mxu2 %v2999_v54  ;;  %v3002_v32 = vand.u32 4294901760, %v2079_v50 }
  0x60   :  { %842 = vmatpush.msra.mxu3 %v1989_v44  ;;  %457 = vmatmul.f32.vlgmr.msrb.gmra.mxu0 %v2118_v38 }
  0x61   :  { %652 = vmatmul.f32.vlgmr.msrb.gmra.mxu3 %v2220_v30  ;;  %680 = vmatpush.msra.mxu0 %v2079_v50  ;;  %v3005_v50 = vand.u32 4294901760, %v2116_v7 }
  0x62   :  { %724 = vmatpush.msra.mxu1 %v1989_v44  ;;  %783 = vmatpush.msra.mxu2 %v3000_v8  ;;  %v3004_v44 = vand.u32 4294901760, %v2104_v60  ;;  %v2452_v8 = vsub.f32 %v108_v34, %v2427_v17 }
  0x63   :  { %844 = vmatpush.msra.mxu3 %v2004_v55  ;;  %498 = vmatmul.f32.vlgmr.msrb.gmra.mxu1 %v2118_v38  ;;  %v113_v38 = vld [vmem:[#allocation7 + $0x158] sm:$0xff] }
  0x64   :  { %683 = vmatpush.msra.mxu0 %v2092_v31  ;;  %726 = vmatpush.msra.mxu1 %v2004_v55  ;;  %v116_v55 = vld [vmem:[#allocation7 + $0x170] sm:$0xff] }
  0x65   :  { %787 = vmatpush.msra.mxu2 %v3001_v0  ;;  %846 = vmatpush.msra.mxu3 %v2025_v18 }
  0x66   :  { %686 = vmatpush.msra.mxu0 %v2104_v60  ;;  %728 = vmatpush.msra.mxu1 %v2025_v18  ;;  %v549_v18 = vsub.f32 %v2287_v12, %v548_v40 }
  0x67   :  { %791 = vmatpush.msra.mxu2 %v3002_v32  ;;  %848 = vmatpush.msra.mxu3 %v2038_v47  ;;  %v104_v32 = vld [vmem:[#allocation7 + $0x110] sm:$0xff] }
  0x68   :  { %689 = vmatpush.msra.mxu0 %v2116_v7  ;;  %730 = vmatpush.msra.mxu1 %v2038_v47  ;;  %v117_v47 = vld [vmem:[#allocation7 + $0x178] sm:$0xff] }
  0x69   :  { %795 = vmatpush.msra.mxu2 %v3003_v27  ;;  %850 = vmatpush.msra.mxu3 %v2053_v33  ;;  %v2325_v31 = vand.u32 4294901760, %v117_v47  ;;  %v2455_v27 = vand.u32 4294901760, %v64_v63 }
  0x6a   :  { %692 = vmatpush.msra.mxu0 %v2129_v49  ;;  %732 = vmatpush.msra.mxu1 %v2053_v33  ;;  %v550_v33 = vand.u32 4294901760, %v549_v18 }
  0x6b   :  { %799 = vmatpush.msra.mxu2 %v3004_v44  ;;  %852 = vmatpush.msra.mxu3 %v2068_v24  ;;  %v2340_v7 = vsub.f32 %v117_v47, %v2325_v31  ;;  %v2462_v44 = vand.u32 4294901760, %v105_v25 }
  0x6c   :  { %695 = vmatpush.msra.mxu0 %v2158_v29  ;;  %734 = vmatpush.msra.mxu1 %v2068_v24  ;;  %v115_v24 = vld [vmem:[#allocation7 + $0x168] sm:$0xff] }
  0x6d   :  { %803 = vmatpush.msra.mxu2 %v3005_v50  ;;  %854 = vmatpush.msra.mxu3 %v2081_v23  ;;  %v2337_v60 = vand.u32 4294901760, %v115_v24  ;;  %v929_v29 = vand.u32 4294901760, %v2340_v7 }
  0x6e   :  { %461 = vmatmul.f32.gmra.mxu0 %v2179_v19  ;;  %736 = vmatpush.msra.mxu1 %v2081_v23  ;;  %v2332_v23 = vand.u32 4294901760, %v116_v55 }
  0x6f   :  { %698 = vmatpush.msra.mxu0 %v2171_v9  ;;  %807 = vmatpush.msra.mxu2 %v617_v15  ;;  %v2357_v15 = vand.u32 4294901760, %v113_v38  ;;  %v2361_v9 = vsub.f32 %v115_v24, %v2337_v60  ;;  %v2474_v24 = vand.u32 4294901760, %v104_v32 }
  0x70   :  { %856 = vmatpush.msra.mxu3 %v2094_v37  ;;  %738 = vmatpush.msra.mxu1 %v2094_v37  ;;  %v114_v37 = vld [vmem:[#allocation7 + $0x160] sm:$0xff]  ;;  %v2348_v49 = vsub.f32 %v116_v55, %v2332_v23 }
  0x71   :  { %701 = vmatpush.msra.mxu0 %v2186_v36  ;;  %811 = vmatpush.msra.mxu2 %v623_v10  ;;  %v112_v10 = vld [vmem:[#allocation7 + $0x150] sm:$0xff] }
  0x72   :  { %858 = vmatpush.msra.mxu3 %v2106_v57  ;;  %551 = vmatmul.f32.gmra.mxu2 %v550_v33  ;;  %v2371_v36 = vand.u32 4294901760, %v112_v10 }
  0x73   :  { %704 = vmatpush.msra.mxu0 %v2199_v41  ;;  %740 = vmatpush.msra.mxu1 %v2106_v57  ;;  %v2353_v57 = vand.u32 4294901760, %v114_v37  ;;  %v941_v41 = vand.u32 4294901760, %v2361_v9 }
  0x74   :  { %815 = vmatpush.msra.mxu2 %v629_v52  ;;  %860 = vmatpush.msra.mxu3 %v2134_v3  ;;  %v2401_v48 = vsub.f32 %v112_v10, %v2371_v36  ;;  %v2484_v10 = vsub.f32 %v64_v63, %v2455_v27 }
  0x75   :  { %656 = vmatmul.f32.gmra.mxu3 %v2274_v43  ;;  %707 = vmatpush.msra.mxu0 %v2216_v1  ;;  %v2374_v52 = vsub.f32 %v114_v37, %v2353_v57  ;;  %v942_v61 = vsub.f32 %v2361_v9, %v941_v41  ;;  %v2953_v37 = vand.u32 4294901760, %v2452_v8 }
  0x76   :  { %742 = vmatpush.msra.mxu1 %v2134_v3  ;;  %819 = vmatpush.msra.mxu2 %v635_v58  ;;  %v935_v3 = vand.u32 4294901760, %v2348_v49  ;;  %v110_v58 = vld [vmem:[#allocation7 + $0x140] sm:$0xff] }
  0x77   :  { %862 = vmatpush.msra.mxu3 %v2147_v4  ;;  %502 = vmatmul.f32.gmra.mxu1 %v2179_v19  ;;  %v111_v19 = vld [vmem:[#allocation7 + $0x148] sm:$0xff]  ;;  %v2395_v20 = vand.u32 4294901760, %v110_v58  ;;  %v2964_v28 = vand.u32 4294901760, %v2374_v52  ;;  %v943_v14 = vand.u32 4294901760, %v942_v61  ;;  %v102_v61 = vld [vmem:[#allocation7 + $0x100] sm:$0xff] }
  0x78   :  { %710 = vmatmul.f32.vlgmr.msra.gmra.mxu0 %v2238_v62  ;;  %744 = vmatpush.msra.mxu1 %v2147_v4  ;;  %v930_v4 = vsub.f32 %v2340_v7, %v929_v29  ;;  %v936_v1 = vsub.f32 %v2348_v49, %v935_v3  ;;  %v106_v62 = vld [vmem:[#allocation7 + $0x120] sm:$0xff] }
  0x79   :  { %879 = vmatpush.msrb.mxu0 %v2325_v31  ;;  %823 = vmatpush.msra.mxu2 %v641_v2  ;;  %v2384_v2 = vsub.f32 %v113_v38, %v2357_v15  ;;  %v2419_v53 = vsub.f32 %v110_v58, %v2395_v20  ;;  %v948_v45 = vsub.f32 %v2374_v52, %v2964_v28  ;;  %v2449_v54 = vand.u32 4294901760, %v106_v62 }
  0x7a   :  { %864 = vmatpush.msra.mxu3 %v2160_v5  ;;  %746 = vmatpush.msra.mxu1 %v2160_v5  ;;  %v2388_v5 = vand.u32 4294901760, %v111_v19  ;;  %v931_v16 = vand.u32 4294901760, %v930_v4 }
  0x7b   :  { %881 = vmatpush.msrb.mxu0 %v2332_v23  ;;  %827 = vmatpush.msra.mxu2 %v647_v11  ;;  %v2961_v11 = vand.u32 4294901760, %v2384_v2  ;;  %v2956_v22 = vand.u32 4294901760, %v2419_v53  ;;  %v949_v21 = vand.u32 4294901760, %v948_v45  ;;  %v2478_v38 = vsub.f32 %v106_v62, %v2449_v54 }
  0x7c   :  { %866 = vmatpush.msra.mxu3 %v2177_v59  ;;  %829 = vmatmul.f32.vlgmr.msra.gmra.mxu2 %v2220_v30  ;;  %v2414_v39 = vsub.f32 %v111_v19, %v2388_v5  ;;  %v2965_v45 = vand.u32 4294901760, %v2484_v10 }
  0x7d   :  { %883 = vmatpush.msrb.mxu0 %v2337_v60  ;;  %1034 = vmatpush.msrb.mxu2 %v2340_v7  ;;  %v954_v51 = vsub.f32 %v2384_v2, %v2961_v11  ;;  %v972_v33 = vsub.f32 %v2419_v53, %v2956_v22  ;;  %v2950_v34 = vand.u32 4294901760, %v2478_v38 }
  0x7e   :  { %748 = vmatpush.msra.mxu1 %v2177_v59  ;;  %868 = vmatpush.msra.mxu3 %v2194_v46  ;;  %v2411_v59 = vand.u32 4294901760, %v109_v26  ;;  %v2957_v56 = vand.u32 4294901760, %v2414_v39 }
  0x7f   :  { %870 = vmatmul.f32.vlgmr.msra.gmra.mxu3 %v2220_v30  ;;  %885 = vmatpush.msrb.mxu0 %v2353_v57  ;;  %v937_v30 = vand.u32 4294901760, %v936_v1  ;;  %v955_v0 = vand.u32 4294901760, %v954_v51  ;;  %v2492_v1 = vsub.f32 %v105_v25, %v2462_v44  ;;  %v2518_v25 = vand.u32 4294901760, %v102_v61 }
  0x80   :  { %1037 = vmatpush.msrb.mxu2 %v2348_v49  ;;  %1092 = vmatpush.msrb.mxu3 %v2325_v31  ;;  %v2440_v6 = vsub.f32 %v109_v26, %v2411_v59  ;;  %v966_v18 = vsub.f32 %v2414_v39, %v2957_v56  ;;  %v984_v26 = vsub.f32 %v2452_v8, %v2953_v37 }
  0x81   :  { %750 = vmatpush.msra.mxu1 %v2194_v46  ;;  %887 = vmatpush.msrb.mxu0 %v2357_v15  ;;  %v2958_v46 = vand.u32 4294901760, %v2401_v48  ;;  %v2952_v62 = vand.u32 4294901760, %v2492_v1 }
  0x82   :  { %754 = vmatmul.f32.vlgmr.msra.gmra.mxu1 %v540_v42  ;;  %1040 = vmatpush.msrb.mxu2 %v2361_v9  ;;  %v2436_v42 = vand.u32 4294901760, %v107_v35  ;;  %v2954_v47 = vand.u32 4294901760, %v2440_v6  ;;  %v967_v19 = vand.u32 4294901760, %v966_v18  ;;  %v124_v9 = vld [vmem:[#allocation7 + $0x1b0] sm:$0xff] }
  0x83   :  { %932 = vmatpush.msrb.mxu1 %v931_v16  ;;  %1094 = vmatpush.msrb.mxu3 %v2332_v23  ;;  %v960_v13 = vsub.f32 %v2401_v48, %v2958_v46  ;;  %v128_v46 = vld [vmem:[#allocation7 + $0x1d0] sm:$0xff] }
  0x84   :  { %889 = vmatpush.msrb.mxu0 %v2371_v36  ;;  %1043 = vmatpush.msrb.mxu2 %v2374_v52  ;;  %v2466_v50 = vsub.f32 %v107_v35, %v2436_v42  ;;  %v978_v58 = vsub.f32 %v2440_v6, %v2954_v47  ;;  %v68_v35 = vld [vmem:[#allocation5 + $0x30] sm:$0xff] }
  0x85   :  { %938 = vmatpush.msrb.mxu1 %v937_v30  ;;  %1096 = vmatpush.msrb.mxu3 %v2337_v60  ;;  %v961_v55 = vand.u32 4294901760, %v960_v13  ;;  %v2504_v30 = vsub.f32 %v104_v32, %v2474_v24  ;;  %v2520_v13 = vand.u32 4294901760, %v68_v35  ;;  %v996_v32 = vsub.f32 %v2478_v38, %v2950_v34 }
  0x86   :  { %715 = vmatmul.f32.gmra.mxu0 %v2287_v12  ;;  %833 = vmatmul.f32.gmra.mxu2 %v2274_v43  ;;  %v2951_v4 = vand.u32 4294901760, %v2466_v50  ;;  %v973_v12 = vand.u32 4294901760, %v972_v33  ;;  %v2547_v34 = vsub.f32 %v102_v61, %v2518_v25 }
  0x87   :  { %891 = vmatpush.msrb.mxu0 %v2388_v5  ;;  %944 = vmatpush.msrb.mxu1 %v943_v14  ;;  %v979_v14 = vand.u32 4294901760, %v978_v58  ;;  %v2955_v33 = vand.u32 4294901760, %v2504_v30 }
  0x88   :  { %1046 = vmatpush.msrb.mxu2 %v2384_v2  ;;  %1098 = vmatpush.msrb.mxu3 %v2353_v57  ;;  %v990_v51 = vsub.f32 %v2466_v50, %v2951_v4  ;;  %v2550_v4 = vsub.f32 %v68_v35, %v2520_v13  ;;  %v129_v35 = vld [vmem:[#allocation7 + $0x1d8] sm:$0xff]  ;;  %v2962_v22 = vand.u32 4294901760, %v2547_v34 }
  0x89   :  { %874 = vmatmul.f32.gmra.mxu3 %v2274_v43  ;;  %893 = vmatpush.msrb.mxu0 %v2395_v20  ;;  %v103_v43 = vld [vmem:[#allocation7 + $0x108] sm:$0xff]  ;;  %v2579_v56 = vand.u32 4294901760, %v129_v35 }
  0x8a   :  { %950 = vmatpush.msrb.mxu1 %v949_v21  ;;  %1049 = vmatpush.msrb.mxu2 %v2401_v48  ;;  %v2500_v16 = vand.u32 4294901760, %v103_v43  ;;  %v132_v21 = vld [vmem:[#allocation7 + $0x1f0] sm:$0xff]  ;;  %v991_v58 = vand.u32 4294901760, %v990_v51  ;;  %v997_v51 = vand.u32 4294901760, %v996_v32 }
  0x8b   :  { %1100 = vmatpush.msrb.mxu3 %v2357_v15  ;;  %760 = vmatmul.f32.gmra.mxu1 %v548_v40  ;;  %v133_v40 = vld [vmem:[#allocation7 + $0x1f8] sm:$0xff]  ;;  %v2604_v7 = vsub.f32 %v129_v35, %v2579_v56 }
  0x8c   :  { %895 = vmatpush.msrb.mxu0 %v2411_v59  ;;  %956 = vmatpush.msrb.mxu1 %v955_v0  ;;  %v2514_v63 = vand.u32 4294901760, %v133_v40  ;;  %v985_v0 = vand.u32 4294901760, %v984_v26  ;;  %v2527_v18 = vsub.f32 %v103_v43, %v2500_v16  ;;  %v1002_v43 = vsub.f32 %v2492_v1, %v2952_v62 }
  0x8d   :  { %1052 = vmatpush.msrb.mxu2 %v2414_v39  ;;  %1102 = vmatpush.msrb.mxu3 %v2371_v36  ;;  %v2542_v26 = vand.u32 4294901760, %v132_v21 }
  0x8e   :  { %897 = vmatpush.msrb.mxu0 %v2427_v17  ;;  %962 = vmatpush.msrb.mxu1 %v961_v55  ;;  %v913_v55 = vsub.f32 %v2484_v10, %v2965_v45  ;;  %v2959_v62 = vand.u32 4294901760, %v2527_v18  ;;  %v1003_v47 = vand.u32 4294901760, %v1002_v43 }
  0x8f   :  { %1055 = vmatpush.msrb.mxu2 %v2419_v53  ;;  %1104 = vmatpush.msrb.mxu3 %v2388_v5  ;;  %v2564_v32 = vsub.f32 %v132_v21, %v2542_v26 }
  0x90   :  { %899 = vmatpush.msrb.mxu0 %v2436_v42  ;;  %968 = vmatpush.msrb.mxu1 %v967_v19  ;;  %v131_v19 = vld [vmem:[#allocation7 + $0x1e8] sm:$0xff]  ;;  %v914_v61 = vand.u32 4294901760, %v913_v55  ;;  %v2963_v55 = vand.u32 4294901760, %v2550_v4  ;;  %v1014_v43 = vsub.f32 %v2527_v18, %v2959_v62 }
  0x91   :  { %1058 = vmatpush.msrb.mxu2 %v2440_v6  ;;  %1106 = vmatpush.msrb.mxu3 %v2395_v20  ;;  %v2557_v37 = vand.u32 4294901760, %v131_v19 }
  0x92   :  { %901 = vmatpush.msrb.mxu0 %v2449_v54  ;;  %974 = vmatpush.msrb.mxu1 %v973_v12  ;;  %v2540_v12 = vsub.f32 %v133_v40, %v2514_v63  ;;  %v1008_v40 = vsub.f32 %v2504_v30, %v2955_v33 }
  0x93   :  { %1061 = vmatpush.msrb.mxu2 %v2452_v8  ;;  %1108 = vmatpush.msrb.mxu3 %v2411_v59  ;;  %v2577_v21 = vsub.f32 %v131_v19, %v2557_v37  ;;  %v127_v19 = vld [vmem:[#allocation7 + $0x1c8] sm:$0xff] }
  0x94   :  { %903 = vmatpush.msrb.mxu0 %v2462_v44  ;;  %980 = vmatpush.msrb.mxu1 %v979_v14  ;;  %v130_v14 = vld [vmem:[#allocation7 + $0x1e0] sm:$0xff] }
  0x95   :  { %1064 = vmatpush.msrb.mxu2 %v2466_v50  ;;  %1110 = vmatpush.msrb.mxu3 %v2427_v17  ;;  %v2566_v33 = vand.u32 4294901760, %v130_v14  ;;  %v2967_v11 = vand.u32 4294901760, %v2577_v21 }
  0x96   :  { %905 = vmatpush.msrb.mxu0 %v2474_v24  ;;  %986 = vmatpush.msrb.mxu1 %v985_v0  ;;  %v2960_v0 = vand.u32 4294901760, %v2540_v12 }
  0x97   :  { %1067 = vmatpush.msrb.mxu2 %v2478_v38  ;;  %1112 = vmatpush.msrb.mxu3 %v2436_v42  ;;  %3006 = vst [vmem:[#allocation12_spill] sm:$0xff] %v2566_v33  ;;  %v2588_v62 = vsub.f32 %v130_v14, %v2566_v33  ;;  %v1015_v14 = vand.u32 4294901760, %v1014_v43  ;;  %v125_v43 = vld [vmem:[#allocation7 + $0x1b8] sm:$0xff] }
  0x98   :  { %907 = vmatpush.msrb.mxu0 %v2500_v16  ;;  %992 = vmatpush.msrb.mxu1 %v991_v58  ;;  %v1009_v58 = vand.u32 4294901760, %v1008_v40  ;;  %v2966_v40 = vand.u32 4294901760, %v2564_v32 }
  0x99   :  { %1070 = vmatpush.msrb.mxu2 %v2492_v1  ;;  %1114 = vmatpush.msrb.mxu3 %v2449_v54  ;;  %v2968_v35 = vand.u32 4294901760, %v2588_v62 }
  0x9a   :  { %909 = vmatpush.msrb.mxu0 %v2518_v25  ;;  %998 = vmatpush.msrb.mxu1 %v997_v51  ;;  %v1302_v51 = vsub.f32 %v2540_v12, %v2960_v0  ;;  %v2599_v0 = vand.u32 4294901760, %v128_v46 }
  0x9b   :  { %1073 = vmatpush.msrb.mxu2 %v2504_v30  ;;  %1116 = vmatpush.msrb.mxu3 %v2462_v44 }
  0x9c   :  { %915 = vmatmul.f32.vlgmr.msrb.gmra.mxu0 %v914_v61  ;;  %1004 = vmatpush.msrb.mxu1 %v1003_v47  ;;  %v1020_v61 = vsub.f32 %v2547_v34, %v2962_v22  ;;  %v921_v47 = vsub.f32 %v2550_v4, %v2963_v55  ;;  %v2609_v22 = vand.u32 4294901760, %v127_v19  ;;  %v1303_v55 = vand.u32 4294901760, %v1302_v51 }
  0x9d   :  { %1139 = vmatpush.msra.mxu0 %v929_v29  ;;  %1076 = vmatpush.msrb.mxu2 %v2527_v18  ;;  %v126_v29 = vld [vmem:[#allocation7 + $0x1c0] sm:$0xff]  ;;  %v2621_v28 = vsub.f32 %v128_v46, %v2599_v0  ;;  %v1314_v51 = vsub.f32 %v2577_v21, %v2967_v11  ;;  %v1320_v11 = vsub.f32 %v2588_v62, %v2968_v35 }
  0x9e   :  { %1118 = vmatpush.msrb.mxu3 %v2474_v24  ;;  %1010 = vmatpush.msrb.mxu1 %v1009_v58  ;;  %v1308_v58 = vsub.f32 %v2564_v32, %v2966_v40  ;;  %v1021_v49 = vand.u32 4294901760, %v1020_v61  ;;  %v2623_v45 = vand.u32 4294901760, %v126_v29  ;;  %v3008_v61 = vand.u32 4294901760, %v2374_v52  ;;  %v123_v40 = vld [vmem:[#allocation7 + $0x1a8] sm:$0xff]  ;;  %v122_v35 = vld [vmem:[#allocation7 + $0x1a0] sm:$0xff] }
  0x9f   :  { %1143 = vmatpush.msra.mxu0 %v935_v3  ;;  %1079 = vmatpush.msrb.mxu2 %v2547_v34  ;;  %v922_v3 = vand.u32 4294901760, %v921_v47  ;;  %v2635_v46 = vsub.f32 %v127_v19, %v2609_v22  ;;  %v2637_v47 = vand.u32 4294901760, %v125_v43  ;;  %v2647_v19 = vand.u32 4294901760, %v124_v9 }
  0xa0   :  { %1120 = vmatpush.msrb.mxu3 %v2500_v16  ;;  %1082 = vmatmul.f32.vlgmr.msrb.gmra.mxu2 %v2484_v10  ;;  %v2645_v52 = vsub.f32 %v126_v29, %v2623_v45  ;;  %v2674_v29 = vand.u32 4294901760, %v122_v35 }
  0xa1   :  { %1147 = vmatpush.msra.mxu0 %v941_v41  ;;  %1251 = vmatpush.msra.mxu2 %v2514_v63  ;;  %v3007_v41 = vand.u32 4294901760, %v2484_v10  ;;  %v2969_v10 = vand.u32 4294901760, %v2621_v28 }
  0xa2   :  { %1016 = vmatpush.msrb.mxu1 %v1015_v14  ;;  %1122 = vmatpush.msrb.mxu3 %v2518_v25  ;;  %v1309_v14 = vand.u32 4294901760, %v1308_v58  ;;  %v3010_v58 = vand.u32 4294901760, %v2604_v7 }
  0xa3   :  { %1126 = vmatmul.f32.vlgmr.msrb.gmra.mxu3 %v3007_v41  ;;  %1151 = vmatpush.msra.mxu0 %v3008_v61  ;;  %v3009_v41 = vand.u32 4294901760, %v2384_v2  ;;  %v3011_v2 = vand.u32 4294901760, %v2401_v48 }
  0xa4   :  { %1253 = vmatpush.msra.mxu2 %v2542_v26  ;;  %1304 = vmatpush.msra.mxu3 %v1303_v55  ;;  %v1315_v55 = vand.u32 4294901760, %v1314_v51  ;;  %v1326_v61 = vsub.f32 %v2604_v7, %v3010_v58  ;;  %v1321_v51 = vand.u32 4294901760, %v1320_v11  ;;  %v2972_v58 = vand.u32 4294901760, %v2645_v52 }
  0xa5   :  { %1022 = vmatpush.msrb.mxu1 %v1021_v49  ;;  %923 = vmatmul.f32.gmra.mxu0 %v922_v3  ;;  %v2659_v49 = vsub.f32 %v125_v43, %v2637_v47  ;;  %v2661_v3 = vand.u32 4294901760, %v123_v40  ;;  %v2672_v43 = vsub.f32 %v124_v9, %v2647_v19  ;;  %v3012_v11 = vand.u32 4294901760, %v2414_v39 }
  0xa6   :  { %1024 = vmatmul.f32.vlgmr.msrb.gmra.mxu1 %v2455_v27  ;;  %1155 = vmatpush.msra.mxu0 %v3009_v41  ;;  %v121_v41 = vld [vmem:[#allocation7 + $0x198] sm:$0xff]  ;;  %v1327_v48 = vand.u32 4294901760, %v1326_v61  ;;  %v3014_v39 = vand.u32 4294901760, %v2550_v4 }
  0xa7   :  { %1210 = vmatpush.msra.mxu1 %v2325_v31  ;;  %1255 = vmatpush.msra.mxu2 %v2557_v37  ;;  %v1332_v31 = vsub.f32 %v2621_v28, %v2969_v10  ;;  %v2685_v9 = vsub.f32 %v123_v40, %v2661_v3  ;;  %v2687_v10 = vand.u32 4294901760, %v121_v41  ;;  %v2973_v40 = vand.u32 4294901760, %v2672_v43 }
  0xa8   :  { %1310 = vmatpush.msra.mxu3 %v1309_v14  ;;  %1159 = vmatpush.msra.mxu0 %v3011_v2  ;;  %v119_v2 = vld [vmem:[#allocation7 + $0x188] sm:$0xff] }
  0xa9   :  { %1212 = vmatpush.msra.mxu1 %v2332_v23  ;;  %1257 = vmatpush.msra.mxu2 %v2566_v33  ;;  %v3013_v23 = vand.u32 4294901760, %v2635_v46  ;;  %v1333_v61 = vand.u32 4294901760, %v1332_v31  ;;  %v65_v33 = vld [vmem:[#allocation5 + $0x18] sm:$0xff] }
  0xaa   :  { %1316 = vmatpush.msra.mxu3 %v1315_v55  ;;  %1087 = vmatmul.f32.gmra.mxu2 %v2550_v4  ;;  %v120_v55 = vld [vmem:[#allocation7 + $0x190] sm:$0xff] }
  0xab   :  { %1163 = vmatpush.msra.mxu0 %v3012_v11  ;;  %1214 = vmatpush.msra.mxu1 %v2337_v60  ;;  %v1338_v14 = vsub.f32 %v2635_v46, %v3013_v23  ;;  %v3015_v60 = vand.u32 4294901760, %v2419_v53  ;;  %v1344_v11 = vsub.f32 %v2645_v52, %v2972_v58  ;;  %v2699_v23 = vsub.f32 %v122_v35, %v2674_v29 }
  0xac   :  { %1259 = vmatpush.msra.mxu2 %v2579_v56  ;;  %1322 = vmatpush.msra.mxu3 %v1321_v51  ;;  %v2703_v4 = vand.u32 4294901760, %v120_v55  ;;  %v3016_v51 = vand.u32 4294901760, %v2659_v49  ;;  %v2711_v35 = vsub.f32 %v121_v41, %v2687_v10  ;;  %v2716_v58 = vand.u32 4294901760, %v119_v2 }
  0xad   :  { %1132 = vmatmul.f32.gmra.mxu3 %v3014_v39  ;;  %1167 = vmatpush.msra.mxu0 %v3015_v60  ;;  %v1339_v53 = vand.u32 4294901760, %v1338_v14  ;;  %v118_v60 = vld [vmem:[#allocation7 + $0x180] sm:$0xff]  ;;  %v1345_v14 = vand.u32 4294901760, %v1344_v11  ;;  %v1367_v41 = vand.u32 4294901760, %v2699_v23  ;;  %v3018_v39 = vand.u32 4294901760, %v2452_v8 }
  0xae   :  { %1216 = vmatpush.msra.mxu1 %v2353_v57  ;;  %1261 = vmatpush.msra.mxu2 %v2599_v0  ;;  %v1350_v31 = vsub.f32 %v2659_v49, %v3016_v51  ;;  %v3017_v57 = vand.u32 4294901760, %v2440_v6  ;;  %v1356_v51 = vsub.f32 %v2672_v43, %v2973_v40  ;;  %v2731_v6 = vand.u32 4294901760, %v118_v60 }
  0xaf   :  { %1328 = vmatpush.msra.mxu3 %v1327_v48  ;;  %1028 = vmatmul.f32.gmra.mxu1 %v2520_v13  ;;  %v2718_v48 = vand.u32 4294901760, %v65_v33  ;;  %v3019_v11 = vand.u32 4294901760, %v2685_v9  ;;  %v1373_v40 = vand.u32 4294901760, %v2711_v35  ;;  %v3020_v8 = vand.u32 4294901760, %v2466_v50 }
  0xb0   :  { %1171 = vmatpush.msra.mxu0 %v3017_v57  ;;  %1218 = vmatpush.msra.mxu1 %v2357_v15  ;;  %v2729_v15 = vsub.f32 %v120_v55, %v2703_v4  ;;  %v2756_v50 = vsub.f32 %v118_v60, %v2731_v6 }
  0xb1   :  { %1263 = vmatpush.msra.mxu2 %v2609_v22  ;;  %1334 = vmatpush.msra.mxu3 %v1333_v61  ;;  %v1351_v61 = vand.u32 4294901760, %v1350_v31  ;;  %v1362_v57 = vsub.f32 %v2685_v9, %v3019_v11  ;;  %v2745_v55 = vsub.f32 %v65_v33, %v2718_v48  ;;  %v1368_v31 = vsub.f32 %v2699_v23, %v1367_v41 }
  0xb2   :  { %1175 = vmatpush.msra.mxu0 %v3018_v39  ;;  %1220 = vmatpush.msra.mxu1 %v2371_v36  ;;  %v2742_v36 = vsub.f32 %v119_v2, %v2716_v58  ;;  %v3021_v39 = vand.u32 4294901760, %v2478_v38  ;;  %v1374_v2 = vsub.f32 %v2711_v35, %v1373_v40  ;;  %v1391_v11 = vand.u32 4294901760, %v2756_v50 }
  0xb3   :  { %1265 = vmatpush.msra.mxu2 %v2623_v45  ;;  %1340 = vmatpush.msra.mxu3 %v1339_v53  ;;  %v1357_v53 = vand.u32 4294901760, %v1356_v51  ;;  %v1363_v33 = vand.u32 4294901760, %v1362_v57  ;;  %v3022_v51 = vand.u32 4294901760, %v2492_v1  ;;  %v1284_v38 = vand.u32 4294901760, %v2745_v55 }
  0xb4   :  { %1179 = vmatpush.msra.mxu0 %v3020_v8  ;;  %1222 = vmatpush.msra.mxu1 %v2388_v5  ;;  %v1379_v5 = vand.u32 4294901760, %v2729_v15  ;;  %v1369_v60 = vand.u32 4294901760, %v1368_v31  ;;  %v1375_v57 = vand.u32 4294901760, %v1374_v2  ;;  %v3024_v8 = vand.u32 4294901760, %v2527_v18 }
  0xb5   :  { %1267 = vmatpush.msra.mxu2 %v2637_v47  ;;  %1346 = vmatpush.msra.mxu3 %v1345_v14  ;;  %v69_v14 = vld [vmem:[#allocation5 + $0x38] sm:$0xff]  ;;  %v3027_v2 = vand.u32 4294901760, %v2564_v32 }
  0xb6   :  { %1183 = vmatpush.msra.mxu0 %v3021_v39  ;;  %1224 = vmatpush.msra.mxu1 %v2395_v20  ;;  %v1385_v20 = vand.u32 4294901760, %v2742_v36  ;;  %v1380_v1 = vsub.f32 %v2729_v15, %v1379_v5 }
  0xb7   :  { %1269 = vmatpush.msra.mxu2 %v2647_v19  ;;  %1352 = vmatpush.msra.mxu3 %v1351_v61  ;;  %v3023_v61 = vand.u32 4294901760, %v2504_v30  ;;  %v1285_v30 = vsub.f32 %v2745_v55, %v1284_v38 }
  0xb8   :  { %1187 = vmatpush.msra.mxu0 %v3022_v51  ;;  %1226 = vmatpush.msra.mxu1 %v2411_v59  ;;  %v2775_v59 = vand.u32 4294901760, %v69_v14  ;;  %v1381_v18 = vand.u32 4294901760, %v1380_v1 }
  0xb9   :  { %1271 = vmatpush.msra.mxu2 %v2661_v3  ;;  %1358 = vmatpush.msra.mxu3 %v1357_v53  ;;  %v3025_v53 = vand.u32 4294901760, %v2547_v34  ;;  %v1286_v34 = vand.u32 4294901760, %v1285_v30 }
  0xba   :  { %1191 = vmatpush.msra.mxu0 %v3023_v61  ;;  %1228 = vmatpush.msra.mxu1 %v2427_v17  ;;  %v1386_v17 = vsub.f32 %v2742_v36, %v1385_v20  ;;  %v2795_v31 = vsub.f32 %v69_v14, %v2775_v59 }
  0xbb   :  { %1273 = vmatpush.msra.mxu2 %v2674_v29  ;;  %1364 = vmatpush.msra.mxu3 %v1363_v33 }
  0xbc   :  { %1195 = vmatpush.msra.mxu0 %v3024_v8  ;;  %1230 = vmatpush.msra.mxu1 %v2436_v42  ;;  %v1392_v42 = vsub.f32 %v2756_v50, %v1391_v11  ;;  %v1387_v39 = vand.u32 4294901760, %v1386_v17  ;;  %v1292_v33 = vand.u32 4294901760, %v2795_v31 }
  0xbd   :  { %1275 = vmatpush.msra.mxu2 %v2687_v10  ;;  %1370 = vmatpush.msra.mxu3 %v1369_v60 }
  0xbe   :  { %1199 = vmatpush.msra.mxu0 %v3025_v53  ;;  %1232 = vmatpush.msra.mxu1 %v2449_v54  ;;  %v1393_v54 = vand.u32 4294901760, %v1392_v42 }
  0xbf   :  { %1277 = vmatpush.msra.mxu2 %v2703_v4  ;;  %1376 = vmatpush.msra.mxu3 %v1375_v57 }
  0xc0   :  { %1201 = vmatmul.f32.vlgmr.msra.gmra.mxu0 %v2455_v27  ;;  %1234 = vmatpush.msra.mxu1 %v2462_v44  ;;  %v3026_v44 = vand.u32 4294901760, %v2540_v12 }
  0xc1   :  { %1406 = vmatpush.msrb.mxu0 %v2540_v12  ;;  %1279 = vmatpush.msra.mxu2 %v2716_v58  ;;  %v3028_v12 = vand.u32 4294901760, %v2577_v21 }
  0xc2   :  { %1382 = vmatpush.msra.mxu3 %v1381_v18  ;;  %1236 = vmatpush.msra.mxu1 %v2474_v24  ;;  %v1293_v24 = vsub.f32 %v2795_v31, %v1292_v33 }
  0xc3   :  { %1409 = vmatpush.msrb.mxu0 %v2564_v32  ;;  %1281 = vmatpush.msra.mxu2 %v2731_v6 }
  0xc4   :  { %1388 = vmatpush.msra.mxu3 %v1387_v39  ;;  %1287 = vmatmul.f32.vlgmr.msra.gmra.mxu2 %v1286_v34  ;;  %v2904_v34 = vld [vmem:[#allocation2] sm:$0xff] }
  0xc5   :  { %1412 = vmatpush.msrb.mxu0 %v2577_v21  ;;  %1511 = vmatpush.msrb.mxu2 %v3026_v44 }
  0xc6   :  { %1238 = vmatpush.msra.mxu1 %v2500_v16  ;;  %1394 = vmatpush.msra.mxu3 %v1393_v54  ;;  %v1294_v16 = vand.u32 4294901760, %v1293_v24 }
  0xc7   :  { %1396 = vmatmul.f32.vlgmr.msra.gmra.mxu3 %v2718_v48  ;;  %1415 = vmatpush.msrb.mxu0 %v2588_v62 }
  0xc8   :  { %1515 = vmatpush.msrb.mxu2 %v3027_v2  ;;  %1582 = vmatpush.msrb.mxu3 %v2514_v63  ;;  %v1626_v2 = vadd.f32 1e-05, %v2904_v34 }
  0xc9   :  { %1240 = vmatpush.msra.mxu1 %v2518_v25  ;;  %1205 = vmatmul.f32.gmra.mxu0 %v2520_v13  ;;  %v3029_v25 = vand.u32 4294901760, %v2588_v62  ;;  %v3032_v62 = vand.u32 4294901760, %v2621_v28 }
  0xca   :  { %1242 = vmatmul.f32.vlgmr.msra.gmra.mxu1 %v2455_v27  ;;  %1418 = vmatpush.msrb.mxu0 %v2604_v7  ;;  %v3030_v27 = vand.u32 4294901760, %v2604_v7  ;;  %1688 = vrcp.f32 %v1626_v2  ;;  %vm1633_vm0 = vweird.f32 %v1626_v2 }
  0xcb   :  { %1464 = vmatpush.msrb.mxu1 %v2514_v63  ;;  %1519 = vmatpush.msrb.mxu2 %v3028_v12  ;;  %v3031_v63 = vld [vmem:[#allocation12_spill] sm:$0xff] }
  0xcc   :  { %1584 = vmatpush.msrb.mxu3 %v2542_v26  ;;  %1421 = vmatpush.msrb.mxu0 %v2621_v28  ;;  %v3034_v28 = vand.u32 4294901760, %v2645_v52 }
  0xcd   :  { %1466 = vmatpush.msrb.mxu1 %v2542_v26  ;;  %1523 = vmatpush.msrb.mxu2 %v3029_v25  ;;  %v281_v26 = vpop.f32.mrf.mxu1 }
  0xce   :  { %1586 = vmatpush.msrb.mxu3 %v2557_v37  ;;  %1295 = vmatmul.f32.gmra.mxu2 %v1294_v16  ;;  %v383_v32 = vpop.f32.mrf.mxu3 }
  0xcf   :  { %1424 = vmatpush.msrb.mxu0 %v2635_v46  ;;  %1468 = vmatpush.msrb.mxu1 %v2557_v37  ;;  %v3033_v37 = vand.u32 4294901760, %v2635_v46 }
  0xd0   :  { %1527 = vmatpush.msrb.mxu2 %v3030_v27  ;;  %1588 = vmatpush.msrb.mxu3 %v3031_v63 }
  0xd1   :  { %1400 = vmatmul.f32.gmra.mxu3 %v2775_v59  ;;  %1427 = vmatpush.msrb.mxu0 %v2645_v52 }
  0xd2   :  { %1470 = vmatpush.msrb.mxu1 %v3031_v63  ;;  %1531 = vmatpush.msrb.mxu2 %v3032_v62  ;;  %v2907_v62 = vld [vmem:[#allocation2 + $0x8] sm:$0xff] }
  0xd3   :  { %1590 = vmatpush.msrb.mxu3 %v2579_v56  ;;  %1246 = vmatmul.f32.gmra.mxu1 %v2520_v13  ;;  %v3036_v13 = vand.u32 4294901760, %v2672_v43 }
  0xd4   :  { %1430 = vmatpush.msrb.mxu0 %v2659_v49  ;;  %1472 = vmatpush.msrb.mxu1 %v2579_v56  ;;  %v3035_v56 = vand.u32 4294901760, %v2659_v49 }
  0xd5   :  { %1535 = vmatpush.msrb.mxu2 %v3033_v37  ;;  %1592 = vmatpush.msrb.mxu3 %v2599_v0 }
  0xd6   :  { %1433 = vmatpush.msrb.mxu0 %v2672_v43  ;;  %1474 = vmatpush.msrb.mxu1 %v2599_v0  ;;  %v339_v0 = vpop.f32.mrf.mxu2  ;;  %v285_v7 = vpop.f32.mrf.mxu1 }
  0xd7   :  { %1539 = vmatpush.msrb.mxu2 %v3034_v28  ;;  %1594 = vmatpush.msrb.mxu3 %v2609_v22 }
  0xd8   :  { %1436 = vmatpush.msrb.mxu0 %v2685_v9  ;;  %1476 = vmatpush.msrb.mxu1 %v2609_v22  ;;  %v3037_v22 = vand.u32 4294901760, %v2685_v9 }
  0xd9   :  { %1543 = vmatpush.msrb.mxu2 %v3035_v56  ;;  %1596 = vmatpush.msrb.mxu3 %v2623_v45 }
  0xda   :  { %1439 = vmatpush.msrb.mxu0 %v2699_v23  ;;  %1478 = vmatpush.msrb.mxu1 %v2623_v45  ;;  %v172_v45 = vpop.f32.mrf.mxu0 }
  0xdb   :  { %1547 = vmatpush.msrb.mxu2 %v3036_v13  ;;  %1598 = vmatpush.msrb.mxu3 %v2637_v47 }
  0xdc   :  { %1442 = vmatpush.msrb.mxu0 %v2711_v35  ;;  %1480 = vmatpush.msrb.mxu1 %v2637_v47  ;;  %v389_v47 = vpop.f32.mrf.mxu3 }
  0xdd   :  { %1551 = vmatpush.msrb.mxu2 %v3037_v22  ;;  %1600 = vmatpush.msrb.mxu3 %v2647_v19  ;;  %v2910_v22 = vadd.f32 1e-05, %v2907_v62 }
  0xde   :  { %1445 = vmatpush.msrb.mxu0 %v2729_v15  ;;  %1482 = vmatpush.msrb.mxu1 %v2647_v19  ;;  %v344_v46 = vpop.f32.mrf.mxu2 }
  0xdf   :  { %1555 = vmatpush.msrb.mxu2 %v1367_v41  ;;  %1602 = vmatpush.msrb.mxu3 %v2661_v3  ;;  %1690 = vrcp.f32 %v2910_v22  ;;  %vm1648_vm4 = vweird.f32 %v2910_v22 }
  0xe0   :  { %1448 = vmatpush.msrb.mxu0 %v2742_v36  ;;  %1484 = vmatpush.msrb.mxu1 %v2661_v3  ;;  %v499_v52 = vpop.f32.mrf.mxu1 }
  0xe1   :  { %1559 = vmatpush.msrb.mxu2 %v1373_v40  ;;  %1604 = vmatpush.msrb.mxu3 %v2674_v29 }
  0xe2   :  { %1451 = vmatpush.msrb.mxu0 %v2756_v50  ;;  %1486 = vmatpush.msrb.mxu1 %v2674_v29  ;;  %v180_v21 = vpop.f32.mrf.mxu0 }
  0xe3   :  { %1563 = vmatpush.msrb.mxu2 %v1379_v5  ;;  %1606 = vmatpush.msrb.mxu3 %v2687_v10 }
  0xe4   :  { %1454 = vmatmul.f32.vlgmr.msrb.gmra.mxu0 %v2745_v55  ;;  %1488 = vmatpush.msrb.mxu1 %v2687_v10  ;;  %v653_v49 = vpop.f32.mrf.mxu3 }
  0xe5   :  { %1567 = vmatpush.msrb.mxu2 %v1385_v20  ;;  %1608 = vmatpush.msrb.mxu3 %v2703_v4 }
  0xe6   :  { %1490 = vmatpush.msrb.mxu1 %v2703_v4  ;;  %v544_v19 = vpop.f32.mrf.mxu2  ;;  %v286_v4 = vadd.f32 %v285_v7, %v180_v21 }
  0xe7   :  { %1571 = vmatpush.msrb.mxu2 %v1391_v11  ;;  %1610 = vmatpush.msrb.mxu3 %v2716_v58 }
  0xe8   :  { %1573 = vmatmul.f32.vlgmr.msrb.gmra.mxu2 %v2718_v48  ;;  %1492 = vmatpush.msrb.mxu1 %v2716_v58  ;;  %v282_v58 = vadd.f32 %v281_v26, %v172_v45  ;;  %v345_v41 = vadd.f32 %v344_v46, %v286_v4  ;;  %v1689_v45 = vpop.eup %1688 }
  0xe9   :  { %1612 = vmatpush.msrb.mxu3 %v2731_v6  ;;  %vm1634_vm1 = vweird.f32 %v1689_v45 }
  0xea   :  { %1614 = vmatmul.f32.vlgmr.msrb.gmra.mxu3 %v2718_v48  ;;  %1494 = vmatpush.msrb.mxu1 %v2731_v6  ;;  %v458_v10 = vpop.f32.mrf.mxu0  ;;  %v340_v9 = vadd.f32 %v339_v0, %v282_v58  ;;  %v390_v55 = vadd.f32 %v389_v47, %v345_v41  ;;  %v1629_v47 = vmul.f32 %v1689_v45, %v1626_v2  ;;  %vm1635_vm2 = vmor %vm1633_vm0, %vm1634_vm1 }
  0xeb   :  { %1498 = vmatmul.f32.vlgmr.msrb.gmra.mxu1 %v1284_v38 }
  0xec   :  { %1459 = vmatmul.f32.gmra.mxu0 %v2795_v31  ;;  %v384_v35 = vadd.f32 %v383_v32, %v340_v9 }
  0xee   :  { %v459_v15 = vadd.f32 %v458_v10, %v384_v35 }
  0xf0   :  { %1577 = vmatmul.f32.gmra.mxu2 %v2775_v59  ;;  %v500_v50 = vadd.f32 %v499_v52, %v459_v15 }
  0xf2   :  { %1618 = vmatmul.f32.gmra.mxu3 %v2775_v59  ;;  %v462_v29 = vpop.f32.mrf.mxu0  ;;  %v545_v20 = vadd.f32 %v544_v19, %v500_v50 }
  0xf3   :  { %1504 = vmatmul.f32.gmra.mxu1 %v1292_v33  ;;  %v463_v14 = vadd.f32 %v462_v29, %v390_v55  ;;  %v1630_v29 = vsub.f32 1.0, %v1629_v47 }
  0xf4   :  { %v503_v3 = vpop.f32.mrf.mxu1  ;;  %v654_v1 = vadd.f32 %v653_v49, %v545_v20  ;;  %v1691_v49 = vpop.eup %1690 }
  0xf5   :  { %v552_v43 = vpop.f32.mrf.mxu2  ;;  %v504_v60 = vadd.f32 %v503_v3, %v463_v14  ;;  %v1644_v4 = vmul.f32 %v1691_v49, %v2910_v22  ;;  %vm1649_vm5 = vweird.f32 %v1691_v49 }
  0xf6   :  { %vm1650_vm6 = vmor %vm1648_vm4, %vm1649_vm5 }
  0xf7   :  { %v553_v57 = vadd.f32 %v552_v43, %v504_v60  ;;  %v1645_v50 = vsub.f32 1.0, %v1644_v4 }
  0xf8   :  { %v657_v40 = vpop.f32.mrf.mxu3 }
  0xf9   :  { %v658_v30 = vadd.f32 %v657_v40, %v553_v57 }
  0xfa   :  { %v711_v23 = vpop.f32.mrf.mxu0 }
  0xfb   :  { %v712_v59 = vadd.f32 %v711_v23, %v654_v1  ;;  %v1631_v23 = vmul.f32 %v1689_v45, %v1630_v29 }
  0xfd   :  { %v1632_v55 = vadd.f32 %v1689_v45, %v1631_v23 }
  0xff   :  { %v755_v48 = vpop.f32.mrf.mxu1  ;;  %v830_v6 = vpop.f32.mrf.mxu2  ;;  %v1636_v1 = vsel %vm1635_vm2, %v1689_v45, %v1632_v55 }
 0x100   :  { %v756_v17 = vadd.f32 %v755_v48, %v712_v59 }
 0x102   :  { %v871_v5 = vpop.f32.mrf.mxu3  ;;  %v831_v42 = vadd.f32 %v830_v6, %v756_v17  ;;  %v1639_v6 = vand.u32 2147483648, %v1626_v2 }
 0x103   :  { %v716_v36 = vpop.f32.mrf.mxu0 }
 0x104   :  { %v717_v39 = vadd.f32 %v716_v36, %v658_v30  ;;  %v872_v54 = vadd.f32 %v871_v5, %v831_v42  ;;  %v1637_v5 = vand.u32 2147483647, %v1626_v2 }
 0x106   :  { %vm1638_vm3 = vcmp.eq.f32.partialorder %v1637_v5, 8.507059e+37 }
 0x108   :  { %v761_v51 = vpop.f32.mrf.mxu1 }
 0x109   :  { %v834_v61 = vpop.f32.mrf.mxu2  ;;  %v762_v33 = vadd.f32 %v761_v51, %v717_v39  ;;  %v1652_v39 = vand.u32 2147483647, %v2910_v22 }
 0x10b   :  { %v835_v12 = vadd.f32 %v834_v61, %v762_v33  ;;  %vm1653_vm7 = vcmp.eq.f32.partialorder %v1652_v39, 8.507059e+37 }
 0x10c   :  { %v875_v11 = vpop.f32.mrf.mxu3 }
 0x10d   :  { %v876_v37 = vadd.f32 %v875_v11, %v835_v12  ;;  %v1646_v11 = vmul.f32 %v1691_v49, %v1645_v50 }
 0x119   :  { %v916_v38 = vpop.f32.mrf.mxu0 }
 0x11a   :  { %v917_v24 = vadd.f32 %v916_v38, %v872_v54  ;;  %v1640_v38 = vor.u32 1.1754944e-38, %v1639_v6 }
 0x11c   :  { %v1641_v30 = vsel %vm1638_vm3, %v1640_v38, %v1636_v1 }
 0x122   :  { %v924_v18 = vpop.f32.mrf.mxu0 }
 0x123   :  { %v1025_v8 = vpop.f32.mrf.mxu1  ;;  %v1083_v53 = vpop.f32.mrf.mxu2  ;;  %v925_v13 = vadd.f32 %v924_v18, %v876_v37 }
 0x124   :  { %v1026_v25 = vadd.f32 %v1025_v8, %v917_v24 }
 0x126   :  { %v1127_v31 = vpop.f32.mrf.mxu3  ;;  %v1084_v28 = vadd.f32 %v1083_v53, %v1026_v25  ;;  %v1654_v53 = vand.u32 2147483648, %v2910_v22 }
 0x128   :  { %v1128_v26 = vadd.f32 %v1127_v31, %v1084_v28  ;;  %v1647_v31 = vadd.f32 %v1691_v49, %v1646_v11  ;;  %v1655_v24 = vor.u32 1.1754944e-38, %v1654_v53 }
 0x12c   :  { %v1029_v44 = vpop.f32.mrf.mxu1 }
 0x12d   :  { %v1088_v27 = vpop.f32.mrf.mxu2  ;;  %v1030_v0 = vadd.f32 %v1029_v44, %v925_v13 }
 0x12f   :  { %v1089_v10 = vadd.f32 %v1088_v27, %v1030_v0 }
 0x130   :  { %v1133_v63 = vpop.f32.mrf.mxu3 }
 0x131   :  { %v1134_v3 = vadd.f32 %v1133_v63, %v1089_v10 }
 0x13d   :  { %v1202_v16 = vpop.f32.mrf.mxu0 }
 0x13e   :  { %v1203_v7 = vadd.f32 %v1202_v16, %v1128_v26  ;;  %v1651_v16 = vsel %vm1650_vm6, %v1691_v49, %v1647_v31 }
 0x13f   :  { %v1656_v27 = vsel %vm1653_vm7, %v1655_v24, %v1651_v16 }
 0x146   :  { %v1206_v21 = vpop.f32.mrf.mxu0 }
 0x147   :  { %v1243_v56 = vpop.f32.mrf.mxu1  ;;  %v1288_v32 = vpop.f32.mrf.mxu2  ;;  %v1207_v9 = vadd.f32 %v1206_v21, %v1134_v3 }
 0x148   :  { %v1244_v52 = vadd.f32 %v1243_v56, %v1203_v7 }
 0x14a   :  { %v1397_v46 = vpop.f32.mrf.mxu3  ;;  %v1289_v58 = vadd.f32 %v1288_v32, %v1244_v52 }
 0x14c   :  { %v1398_v35 = vadd.f32 %v1397_v46, %v1289_v58 }
 0x150   :  { %v1247_v19 = vpop.f32.mrf.mxu1 }
 0x151   :  { %v1296_v40 = vpop.f32.mrf.mxu2  ;;  %v1248_v48 = vadd.f32 %v1247_v19, %v1207_v9 }
 0x153   :  { %v1297_v14 = vadd.f32 %v1296_v40, %v1248_v48 }
 0x154   :  { %v1401_v41 = vpop.f32.mrf.mxu3 }
 0x155   :  { %v1402_v59 = vadd.f32 %v1401_v41, %v1297_v14 }
 0x161   :  { %v1455_v43 = vpop.f32.mrf.mxu0 }
 0x162   :  { %v1456_v15 = vadd.f32 %v1455_v43, %v1398_v35 }
 0x168   :  { %v1499_v36 = vpop.f32.mrf.mxu1 }
 0x169   :  { %v1500_v51 = vadd.f32 %v1499_v36, %v1456_v15  ;;  %v1460_v60 = vpop.f32.mrf.mxu0 }
 0x16a   :  { %v1461_v17 = vadd.f32 %v1460_v60, %v1402_v59 }
 0x16b   :  { %v1574_v20 = vpop.f32.mrf.mxu2 }
 0x16c   :  { %v1575_v61 = vadd.f32 %v1574_v20, %v1500_v51 }
 0x16d   :  { %v1615_v57 = vpop.f32.mrf.mxu3 }
 0x16e   :  { %v1616_v8 = vadd.f32 %v1615_v57, %v1575_v61 }
 0x170   :  { %v1624_v18 = vmul.f32 %v2904_v34, %v1616_v8  ;;  %v1505_v42 = vpop.f32.mrf.mxu1 }
 0x171   :  { %v1506_v54 = vadd.f32 %v1505_v42, %v1461_v17 }
 0x172   :  { %v1642_v33 = vmul.f32 %v1641_v30, %v1624_v18 }
 0x173   :  { %v1578_v44 = vpop.f32.mrf.mxu2 }
 0x174   :  { %1658 = vst [vmem:[#allocation8] sm:$0xff] %v1642_v33  ;;  %v1579_v2 = vadd.f32 %v1578_v44, %v1506_v54 }
 0x175   :  { %v1619_v12 = vpop.f32.mrf.mxu3 }
 0x176   :  { %v1620_v25 = vadd.f32 %v1619_v12, %v1579_v2 }
 0x178   :  { %v1625_v34 = vmul.f32 %v2907_v62, %v1620_v25 }
 0x17a   :  { %v1657_v63 = vmul.f32 %v1656_v27, %v1625_v34 }
 0x17c   :  { %1659 = vst [vmem:[#allocation8 + $0x8] sm:$0xff] %v1657_v63 }
 0x17d   :  { %1672 = dma.vmem_to_hbm [thread:$0]  %s1665_s29, 256, %s1667_s5, [#allocation4], %s1798_s24, %s1798_s24, %s1799_s25  }
 0x17e   :  { %1792 = dma.done.wait [#allocation4], 256  }
 0x17f   :  { %1793 = vsyncadd [#allocation4], 4294967040 }
 0x180   :  { %1677 = vsyncpa [#allocation3], 1 }
 0x181   :  { %1678 = vsyncpa [#allocation6], 1 }
 0x182   :  { %1679 = vsyncpa [#allocation4], 1 }

</bundles_post_ra>
